<compile_context>
chip_gen: v6e
topology: v6e:2x2x1
jax: 0.10.0
libtpu: 0.0.40
codegen_flags: <defaults>
</compile_context>

<pallas_src>
import jax
import jax.numpy as jnp
from jax.experimental import pallas as pl
from jax.experimental.pallas import tpu as pltpu

_LANE = 128
_MAX_TB = 32768          # max lanes per batch tile


def _round_up(n, m):
    return ((n + m - 1) // m) * m


def _fused_two_head_kernel(x_ref, w1_ref, b1_ref, w2_ref, b2_ref,
                           o1_ref, o2_ref):
    # x_ref:  (3, TB)  batch along lanes (dense)
    # wN_ref: (4, 3)   fused per-head weight (resident)
    # bN_ref: (4, 1)   fused per-head bias   (resident)
    # oN_ref: (4, TB)  lane-dense head outputs
    x0 = x_ref[0:1, :]
    x1 = x_ref[1:2, :]
    x2 = x_ref[2:3, :]

    w1 = w1_ref[...]
    w2 = w2_ref[...]

    # K=3, N=4 contraction as broadcast mul+adds on the VPU (a matmul this
    # small wastes the MXU array and pays push/pop latency every grid step).
    o1 = (w1[:, 0:1] * x0 + w1[:, 1:2] * x1 + w1[:, 2:3] * x2) + b1_ref[...]
    o2 = (w2[:, 0:1] * x0 + w2[:, 1:2] * x1 + w2[:, 2:3] * x2) + b2_ref[...]

    o1_ref[...] = o1.astype(o1_ref.dtype)
    o2_ref[...] = o2.astype(o2_ref.dtype)


def prepare_params(params):
    """Fold Linear(3,2) followed by the two Linear(2,4) heads into two fused
    affines acting on the transposed (3, B) input:
        head_i.T = (Wh_i @ W1) @ x.T + (Wh_i @ b1 + bh_i)[:, None]
    Done ONCE, outside the per-call path."""
    w1, b1, wh1, bh1, wh2, bh2 = params
    W1 = wh1 @ w1                         # (4, 3)
    W2 = wh2 @ w1                         # (4, 3)
    B1 = (wh1 @ b1 + bh1)[:, None]        # (4, 1)
    B2 = (wh2 @ b1 + bh2)[:, None]        # (4, 1)
    return W1, B1, W2, B2


def _choose_tile(B):
    if B <= _LANE:
        return B                          # single full-extent block
    # Aim for >= 2 grid steps (v7x megacore), lane-multiple tiles, capped size.
    half = (B + 1) // 2
    return min(_round_up(half, _LANE), _MAX_TB)


def _vmem_limit_bytes(tb):
    lanes = _round_up(max(tb, _LANE), _LANE)
    x_tile = 8 * lanes * 4                # (3, TB) padded to 8 sublanes
    o_tile = 8 * lanes * 4                # (4, TB) padded to 8 sublanes
    params = 4 * (8 * _LANE * 4)          # four tiny resident weight/bias tiles
    need = 2 * x_tile + 2 * (2 * o_tile) + 2 * params   # double-buffered
    return int(min(max(need + (4 << 20), 16 << 20), 64 << 20))


def multihead_forward(x, prepared):
    """x: (B, 3) float32 -> ((B, 4), (B, 4)); semantics of MultiHeadTestNet."""
    W1, B1, W2, B2 = prepared
    B = x.shape[0]
    TB = _choose_tile(B)
    grid = (pl.cdiv(B, TB),)

    x_t = x.T                             # (3, B): layout plumbing only

    def x_map(i): return (0, i)
    def o_map(i): return (0, i)
    def resident(i): return (0, 0)

    out1_t, out2_t = pl.pallas_call(
        _fused_two_head_kernel,
        out_shape=(jax.ShapeDtypeStruct((4, B), jnp.float32),
                   jax.ShapeDtypeStruct((4, B), jnp.float32)),
        grid_spec=pltpu.PrefetchScalarGridSpec(
            num_scalar_prefetch=0,
            grid=grid,
            in_specs=(
                pl.BlockSpec((3, TB), x_map),      # x tile, pipelined
                pl.BlockSpec((4, 3), resident),    # fused W1, resident
                pl.BlockSpec((4, 1), resident),    # fused b1, resident
                pl.BlockSpec((4, 3), resident),    # fused W2, resident
                pl.BlockSpec((4, 1), resident),    # fused b2, resident
            ),
            out_specs=(
                pl.BlockSpec((4, TB), o_map),      # head1, lane-dense
                pl.BlockSpec((4, TB), o_map),      # head2, lane-dense
            ),
        ),
        compiler_params=pltpu.CompilerParams(
            dimension_semantics=("parallel",),
            vmem_limit_bytes=_vmem_limit_bytes(TB)),
        cost_estimate=pl.CostEstimate(
            flops=2 * B * 3 * 8,
            transcendentals=0,
            bytes_accessed=4 * (3 * B + 8 * B + 2 * (4 * 3 + 4))),
    )(x_t, W1, B1, W2, B2)

    # Back to the module's (B, 4) convention.
    return out1_t.T, out2_t.T


def init_params(key):
    """Deterministic params matching the PyTorch module's shapes:
       _linear: weight (2,3), bias (2); _head1/_head2: weight (4,2), bias (4)."""
    ks = jax.random.split(key, 6)
    w1 = jax.random.normal(ks[0], (2, 3), jnp.float32) * 0.5
    b1 = jax.random.normal(ks[1], (2,), jnp.float32) * 0.1
    wh1 = jax.random.normal(ks[2], (4, 2), jnp.float32) * 0.5
    bh1 = jax.random.normal(ks[3], (4,), jnp.float32) * 0.1
    wh2 = jax.random.normal(ks[4], (4, 2), jnp.float32) * 0.5
    bh2 = jax.random.normal(ks[5], (4,), jnp.float32) * 0.1
    return (w1, b1, wh1, bh1, wh2, bh2)


def reference_forward(x, params):
    w1, b1, wh1, bh1, wh2, bh2 = params
    feat = x @ w1.T + b1
    return feat @ wh1.T + bh1, feat @ wh2.T + bh2


if __name__ == "__main__":
    key = jax.random.PRNGKey(0)
    k_param, k_x1, k_x2, k_x3 = jax.random.split(key, 4)
    params = init_params(k_param)
    prepared = prepare_params(params)            # hoisted, done once

    # Small batch (single full-extent block; matches the test-net usage).
    B = 8
    x = jax.random.normal(k_x1, (B, 3), jnp.float32)
    out1, out2 = multihead_forward(x, prepared)
    jax.block_until_ready((out1, out2))
    ref1, ref2 = reference_forward(x, params)
    assert out1.shape == (B, 4) and out2.shape == (B, 4)
    assert jnp.allclose(out1, ref1, atol=1e-5, rtol=1e-5)
    assert jnp.allclose(out2, ref2, atol=1e-5, rtol=1e-5)

    # Ragged batch (exercises the masked tail block; no pad / slice copies).
    B2 = 300
    x2 = jax.random.normal(k_x2, (B2, 3), jnp.float32)
    o1, o2 = multihead_forward(x2, prepared)
    jax.block_until_ready((o1, o2))
    r1, r2 = reference_forward(x2, params)
    assert jnp.allclose(o1, r1, atol=1e-5, rtol=1e-5)
    assert jnp.allclose(o2, r2, atol=1e-5, rtol=1e-5)

    # Multi-tile batch (2-step parallel grid, pipelined / megacore-shardable).
    B3 = 1536
    x3 = jax.random.normal(k_x3, (B3, 3), jnp.float32)
    o1, o2 = multihead_forward(x3, prepared)
    jax.block_until_ready((o1, o2))
    r1, r2 = reference_forward(x3, params)
    assert jnp.allclose(o1, r1, atol=1e-5, rtol=1e-5)
    assert jnp.allclose(o2, r2, atol=1e-5, rtol=1e-5)

    print("KERNEL_OK")
</pallas_src>

<mosaic_0001>
module attributes {stable_mosaic.version = 11 : i64} {
  func.func @_fused_two_head_kernel(%arg0: i32, %arg1: memref<3x8xf32, #tpu.memory_space<vmem>>, %arg2: memref<4x3xf32, #tpu.memory_space<vmem>>, %arg3: memref<4x1xf32, #tpu.memory_space<vmem>>, %arg4: memref<4x3xf32, #tpu.memory_space<vmem>>, %arg5: memref<4x1xf32, #tpu.memory_space<vmem>>, %arg6: memref<4x8xf32, #tpu.memory_space<vmem>>, %arg7: memref<4x8xf32, #tpu.memory_space<vmem>>) attributes {dimension_semantics = [#tpu.dimension_semantics<parallel>], iteration_bounds = array<i64: 1>, scalar_prefetch = 0 : i64, scratch_operands = 0 : i64, tpu.core_type = #tpu.core_type<tc>, window_params = [{transform_indices = @transform_0, window_bounds = array<i64: 3, 8>}, {pipeline_mode = #tpu.pipeline_mode<synchronous>, transform_indices = @transform_1, window_bounds = array<i64: 4, 3>}, {pipeline_mode = #tpu.pipeline_mode<synchronous>, transform_indices = @transform_2, window_bounds = array<i64: 4, 1>}, {pipeline_mode = #tpu.pipeline_mode<synchronous>, transform_indices = @transform_3, window_bounds = array<i64: 4, 3>}, {pipeline_mode = #tpu.pipeline_mode<synchronous>, transform_indices = @transform_4, window_bounds = array<i64: 4, 1>}, {transform_indices = @transform_5, window_bounds = array<i64: 4, 8>}, {transform_indices = @transform_6, window_bounds = array<i64: 4, 8>}]} {
    %c0 = arith.constant 0 : index
    %c0_0 = arith.constant 0 : index
    %0 = vector.load %arg1[%c0, %c0_0] : memref<3x8xf32, #tpu.memory_space<vmem>>, vector<1x8xf32>
    %c1 = arith.constant 1 : index
    %c0_1 = arith.constant 0 : index
    %1 = vector.load %arg1[%c1, %c0_1] : memref<3x8xf32, #tpu.memory_space<vmem>>, vector<1x8xf32>
    %c2 = arith.constant 2 : index
    %c0_2 = arith.constant 0 : index
    %2 = vector.load %arg1[%c2, %c0_2] : memref<3x8xf32, #tpu.memory_space<vmem>>, vector<1x8xf32>
    %c0_3 = arith.constant 0 : index
    %c0_4 = arith.constant 0 : index
    %3 = vector.load %arg2[%c0_3, %c0_4] : memref<4x3xf32, #tpu.memory_space<vmem>>, vector<4x3xf32>
    %c0_5 = arith.constant 0 : index
    %c0_6 = arith.constant 0 : index
    %4 = vector.load %arg4[%c0_5, %c0_6] : memref<4x3xf32, #tpu.memory_space<vmem>>, vector<4x3xf32>
    %5 = vector.extract_strided_slice %3 {offsets = [0, 0], sizes = [4, 1], strides = [1, 1]} : vector<4x3xf32> to vector<4x1xf32>
    %6 = vector.broadcast %5 : vector<4x1xf32> to vector<4x8xf32>
    %7 = vector.broadcast %0 : vector<1x8xf32> to vector<4x8xf32>
    %8 = arith.mulf %6, %7 : vector<4x8xf32>
    %9 = vector.extract_strided_slice %3 {offsets = [0, 1], sizes = [4, 1], strides = [1, 1]} : vector<4x3xf32> to vector<4x1xf32>
    %10 = vector.broadcast %9 : vector<4x1xf32> to vector<4x8xf32>
    %11 = vector.broadcast %1 : vector<1x8xf32> to vector<4x8xf32>
    %12 = arith.mulf %10, %11 : vector<4x8xf32>
    %13 = arith.addf %8, %12 : vector<4x8xf32>
    %14 = vector.extract_strided_slice %3 {offsets = [0, 2], sizes = [4, 1], strides = [1, 1]} : vector<4x3xf32> to vector<4x1xf32>
    %15 = vector.broadcast %14 : vector<4x1xf32> to vector<4x8xf32>
    %16 = vector.broadcast %2 : vector<1x8xf32> to vector<4x8xf32>
    %17 = arith.mulf %15, %16 : vector<4x8xf32>
    %18 = arith.addf %13, %17 : vector<4x8xf32>
    %c0_7 = arith.constant 0 : index
    %c0_8 = arith.constant 0 : index
    %19 = vector.load %arg3[%c0_7, %c0_8] : memref<4x1xf32, #tpu.memory_space<vmem>>, vector<4x1xf32>
    %20 = vector.broadcast %19 : vector<4x1xf32> to vector<4x8xf32>
    %21 = arith.addf %18, %20 : vector<4x8xf32>
    %22 = vector.extract_strided_slice %4 {offsets = [0, 0], sizes = [4, 1], strides = [1, 1]} : vector<4x3xf32> to vector<4x1xf32>
    %23 = vector.broadcast %22 : vector<4x1xf32> to vector<4x8xf32>
    %24 = vector.broadcast %0 : vector<1x8xf32> to vector<4x8xf32>
    %25 = arith.mulf %23, %24 : vector<4x8xf32>
    %26 = vector.extract_strided_slice %4 {offsets = [0, 1], sizes = [4, 1], strides = [1, 1]} : vector<4x3xf32> to vector<4x1xf32>
    %27 = vector.broadcast %26 : vector<4x1xf32> to vector<4x8xf32>
    %28 = vector.broadcast %1 : vector<1x8xf32> to vector<4x8xf32>
    %29 = arith.mulf %27, %28 : vector<4x8xf32>
    %30 = arith.addf %25, %29 : vector<4x8xf32>
    %31 = vector.extract_strided_slice %4 {offsets = [0, 2], sizes = [4, 1], strides = [1, 1]} : vector<4x3xf32> to vector<4x1xf32>
    %32 = vector.broadcast %31 : vector<4x1xf32> to vector<4x8xf32>
    %33 = vector.broadcast %2 : vector<1x8xf32> to vector<4x8xf32>
    %34 = arith.mulf %32, %33 : vector<4x8xf32>
    %35 = arith.addf %30, %34 : vector<4x8xf32>
    %c0_9 = arith.constant 0 : index
    %c0_10 = arith.constant 0 : index
    %36 = vector.load %arg5[%c0_9, %c0_10] : memref<4x1xf32, #tpu.memory_space<vmem>>, vector<4x1xf32>
    %37 = vector.broadcast %36 : vector<4x1xf32> to vector<4x8xf32>
    %38 = arith.addf %35, %37 : vector<4x8xf32>
    %c0_11 = arith.constant 0 : index
    %c0_12 = arith.constant 0 : index
    %39 = vector.load %arg6[%c0_11, %c0_12] : memref<4x8xf32, #tpu.memory_space<vmem>>, vector<4x8xf32>
    tpu.vector_store %arg6[%c0_11, %c0_12], %21 {strides = array<i32>} : memref<4x8xf32, #tpu.memory_space<vmem>>, vector<4x8xf32>,
    %c0_13 = arith.constant 0 : index
    %c0_14 = arith.constant 0 : index
    %40 = vector.load %arg7[%c0_13, %c0_14] : memref<4x8xf32, #tpu.memory_space<vmem>>, vector<4x8xf32>
    tpu.vector_store %arg7[%c0_13, %c0_14], %38 {strides = array<i32>} : memref<4x8xf32, #tpu.memory_space<vmem>>, vector<4x8xf32>,
    return
  }
  func.func @transform_0(%arg0: i32) -> (i32, i32) {
    %c0_i32 = arith.constant 0 : i32
    %c0_i32_0 = arith.constant 0 : i32
    return %c0_i32, %arg0 : i32, i32
  }
  func.func @transform_1(%arg0: i32) -> (i32, i32) {
    %c0_i32 = arith.constant 0 : i32
    %c0_i32_0 = arith.constant 0 : i32
    %c0_i32_1 = arith.constant 0 : i32
    return %c0_i32, %c0_i32_0 : i32, i32
  }
  func.func @transform_2(%arg0: i32) -> (i32, i32) {
    %c0_i32 = arith.constant 0 : i32
    %c0_i32_0 = arith.constant 0 : i32
    %c0_i32_1 = arith.constant 0 : i32
    return %c0_i32, %c0_i32_0 : i32, i32
  }
  func.func @transform_3(%arg0: i32) -> (i32, i32) {
    %c0_i32 = arith.constant 0 : i32
    %c0_i32_0 = arith.constant 0 : i32
    %c0_i32_1 = arith.constant 0 : i32
    return %c0_i32, %c0_i32_0 : i32, i32
  }
  func.func @transform_4(%arg0: i32) -> (i32, i32) {
    %c0_i32 = arith.constant 0 : i32
    %c0_i32_0 = arith.constant 0 : i32
    %c0_i32_1 = arith.constant 0 : i32
    return %c0_i32, %c0_i32_0 : i32, i32
  }
  func.func @transform_5(%arg0: i32) -> (i32, i32) {
    %c0_i32 = arith.constant 0 : i32
    %c0_i32_0 = arith.constant 0 : i32
    return %c0_i32, %arg0 : i32, i32
  }
  func.func @transform_6(%arg0: i32) -> (i32, i32) {
    %c0_i32 = arith.constant 0 : i32
    %c0_i32_0 = arith.constant 0 : i32
    return %c0_i32, %arg0 : i32, i32
  }
}

</mosaic_0001>

<bundles_post_ra>
// kernel: tpu_custom_call.1
= control target key start
LH: loop header
LB: loop body
LE: loop exit
PB: predicated region body
PF: predicated region fallthrough
CT: control target
= control target key end

     0   :  { %12 = vsyncpa [#allocation3], 0  ;;  %v182_v2 = vmov 0   ;;  %s251_s0 = inlined_call_operand.vmem [shape: f32[3,8], index: 0, kind: input, shape index: {}]   ;;  %s252_s1 = inlined_call_operand.vmem [shape: f32[4,3], index: 1, kind: input, shape index: {}]   ;;  %s253_s2 = inlined_call_operand.vmem [shape: f32[4,1], index: 2, kind: input, shape index: {}]   ;;  %s254_s3 = inlined_call_operand.vmem [shape: f32[4,3], index: 3, kind: input, shape index: {}]   ;;  %s255_s4 = inlined_call_operand.vmem [shape: f32[4,1], index: 4, kind: input, shape index: {}]   ;;  %s256_s5 = inlined_call_operand.hbm [shape: f32[4,8], index: 5, kind: output, shape index: {0}]   ;;  %s257_s6 = inlined_call_operand.hbm [shape: f32[4,8], index: 6, kind: output, shape index: {1}]  }
   0x1   :  { %v28_v0 = vld [vmem:[%s254_s3] sm:$0xf]  ;;  %132 = vset.pattern.permute.xlu1 %v182_v2  ;;  %130 = vset.pattern.permute.xlu0 %v182_v2 }
   0x2   :  { %v27_v1 = vld [vmem:[%s252_s1] sm:$0xf]  ;;  %68 = vperm.xlu1 %132, %v28_v0  }
   0x3   :  { %31 = vperm.xlu0 %130, %v27_v1  }
   0x4   :  { %13 = vsyncpa [#allocation5], 0  ;;  %v183_v3 = vmov 1   ;;  %v184_v4 = vmov 2   ;;  %v59_v5 = vld [vmem:[%s253_s2] sm:$0xf] }
   0x5   :  { %v84_v6 = vld [vmem:[%s255_s4] sm:$0xf]  ;;  %s185_s4 = smov [#allocation2]   ;;  %vm91_vm0 = vcmask 60416   ;;  %s186_s9 = smov [#allocation4]  }
   0x6   :  { %133 = vset.pattern.permute.xlu1 %v183_v3  ;;  %v123_v9 = vld [vmem:[%s251_s0 + $0x1] ss:$0 sm:$0xff]  ;;  %v122_v12 = vld [vmem:[%s251_s0] ss:$0 sm:$0xff]  ;;  %v124_v15 = vld [vmem:[%s251_s0 + $0x2] ss:$0 sm:$0xff] }
   0x7   :  { %131 = vset.pattern.permute.xlu0 %v183_v3  ;;  %73 = vperm.xlu1 %133, %v28_v0   ;;  %s100_s8 = sshll.u32 %s185_s4, 4  ;;  %s110_s10 = sshll.u32 %s186_s9, 4  ;;  %s101_s8 = int_to_ptr.vmem [resolvable:$true] %s100_s8  ;;  %s111_s10 = int_to_ptr.vmem [resolvable:$true] %s110_s10 }
   0x8   :  { %40 = vperm.xlu0 %131, %v27_v1   ;;  %s138_s0 = scalar_lea.vmem %s101_s8, 64  ;;  %p143_p1 = scmp.lt.s32.totalorder %s101_s8, %s101_s8 }
   0x9   :  { %p139_p0 = scmp.ne.s32.totalorder %s101_s8, %s138_s0  ;;  %p144_p2 = scmp.lt.s32.totalorder %s138_s0, %s138_s0 }
   0xb   :  { %134 = vset.pattern.permute.xlu1 %v184_v4  ;;  %p145_p3 = por %p144_p2, %p143_p1 }
   0xc   :  { %135 = vset.pattern.permute.xlu0 %v184_v4  ;;  %50 = vperm.xlu1 %134, %v27_v1  }
   0xd   :  { %79 = vperm.xlu0 %135, %v28_v0   ;;  %p146_p4 = pnand %p145_p3, %p139_p0 }
  0x10   :  { %136 = vset.pattern.permute.xlu1 %v182_v2 }
  0x11   :  { %137 = vset.pattern.permute.xlu0 %v182_v2  ;;  %62 = vperm.xlu1 %136, %v59_v5  }
  0x15   :  { %87 = vperm.xlu1 %136, %v84_v6  }
  0x7d   :  { %v69_v7 = vpop.permute.xlu1 %68 }
  0x7e   :  { %v32_v8 = vpop.permute.xlu0 %31  ;;  %v71_v22 = vmul.f32 %v122_v12, %v69_v7 }
  0x7f   :  { %v38_v13 = vmul.f32 %v122_v12, %v32_v8 }
  0x82   :  { %v74_v10 = vpop.permute.xlu1 %73 }
  0x83   :  { %v41_v11 = vpop.permute.xlu0 %40  ;;  %v76_v20 = vmul.f32 %v123_v9, %v74_v10 }
  0x84   :  { %v47_v14 = vmul.f32 %v123_v9, %v41_v11 }
  0x85   :  { %v77_v25 = vadd.f32 %v76_v20, %v71_v22 }
  0x86   :  { %v48_v17 = vadd.f32 %v47_v14, %v38_v13 }
  0x87   :  { %v51_v16 = vpop.permute.xlu1 %50 }
  0x88   :  { %v57_v18 = vmul.f32 %v124_v15, %v51_v16  ;;  %v80_v19 = vpop.permute.xlu0 %79 }
  0x89   :  { %v82_v23 = vmul.f32 %v124_v15, %v80_v19 }
  0x8a   :  { %v58_v21 = vadd.f32 %v57_v18, %v48_v17 }
  0x8b   :  { %v83_v27 = vadd.f32 %v82_v23, %v77_v25 }
  0x8c   :  { %v63_v24 = vpop.permute.xlu1 %62 }
  0x8d   :  { %v65_v26 = vadd.f32 %v63_v24, %v58_v21 }
  0x8f   :  { %92 = vst.msk [vmem:[#allocation2] sm:$0xf] %vm91_vm0, %v65_v26 }
  0x90   :  { %v88_v28 = vpop.permute.xlu1 %87 }
  0x91   :  { %149 = shalt.err (!%p146_p4)
}
  0x92   :  { %103 = dma.vmem_to_hbm [thread:$0]  %s101_s8, 64, %s256_s5, [#allocation3]   ;;  %v90_v29 = vadd.f32 %v88_v28, %v83_v27 }
  0x93   :  { %s158_s13 = scalar_lea.vmem %s111_s10, 64  ;;  %p163_p6 = scmp.lt.s32.totalorder %s111_s10, %s111_s10 }
  0x94   :  { %93 = vst.msk [vmem:[#allocation4] sm:$0xf] %vm91_vm0, %v90_v29  ;;  %p159_p5 = scmp.ne.s32.totalorder %s111_s10, %s158_s13  ;;  %p164_p7 = scmp.lt.s32.totalorder %s158_s13, %s158_s13 }
  0x96   :  { %p165_p8 = por %p164_p7, %p163_p6 }
  0x98   :  { %p166_p9 = pnand %p165_p8, %p159_p5 }
  0x9a   :  { %169 = shalt.err (!%p166_p9)
}
  0x9b   :  { %113 = dma.vmem_to_hbm [thread:$0]  %s111_s10, 64, %s257_s6, [#allocation5]  }
  0x9c   :  { %178 = dma.done.wait [#allocation3], 64  }
  0x9d   :  { %179 = vsyncadd [#allocation3], 4294967232 }
  0x9e   :  { %180 = dma.done.wait [#allocation5], 64  }
  0x9f   :  { %181 = vsyncadd [#allocation5], 4294967232 }
  0xa0   :  { %120 = vsyncpa [#allocation3], 1 }
  0xa1   :  { %121 = vsyncpa [#allocation5], 1 }

</bundles_post_ra>
